<compile_context>
chip_gen: v5e
topology: v5e:2x2
jax: 0.10.0
libtpu: 0.0.40
codegen_flags: <defaults>
</compile_context>

<pallas_src>
import functools

import jax
import jax.numpy as jnp
from jax.experimental import pallas as pl
from jax.experimental.pallas import tpu as pltpu


def _round_up(n: int, m: int) -> int:
    return (n + m - 1) // m * m


def _erf_f32(x):
    # Abramowitz & Stegun 7.1.26 rational approximation, |abs err| < 1.5e-7.
    # Used instead of lax.erf so the kernel never depends on an erf lowering
    # rule being present in Mosaic (only exp / mul / add / abs / where needed).
    p = 0.3275911
    a1, a2, a3, a4, a5 = (0.254829592, -0.284496736, 1.421413741,
                          -1.453152027, 1.061405429)
    z = jnp.abs(x)
    t = 1.0 / (1.0 + p * z)
    poly = ((((a5 * t + a4) * t + a3) * t + a2) * t + a1) * t
    y = 1.0 - poly * jnp.exp(-z * z)
    return jnp.where(x < 0.0, -y, y)


def _gelu_f32(h, approximate: str):
    if approximate == "tanh":
        # 0.5 * x * (1 + tanh(sqrt(2/pi) * (x + 0.044715 x^3)))
        c = 0.7978845608028654  # sqrt(2/pi)
        return 0.5 * h * (1.0 + jnp.tanh(c * (h + 0.044715 * h * h * h)))
    # exact: 0.5 * x * (1 + erf(x / sqrt(2)))
    return 0.5 * h * (1.0 + _erf_f32(h * 0.7071067811865476))


def gpt_neox_mlp_kernel(x_ref, wfc_ref, bfc_ref, wproj_ref, bproj_ref,
                        o_ref, acc_ref, *, approximate: str):
    # x_ref:     (tm, E)
    # wfc_ref:   (E, tI)      bfc_ref:   (1, tI)
    # wproj_ref: (tI, E)      bproj_ref: (1, E)
    # o_ref:     (tm, E)      acc_ref:   (tm, E) f32 scratch (resident over k)
    k = pl.program_id(1)

    @pl.when(k == 0)
    def _():
        acc_ref[...] = jnp.zeros_like(acc_ref)

    # fc slice: (tm, E) @ (E, tI) -> (tm, tI), f32 accumulation on the MXU.
    h = jnp.dot(x_ref[...], wfc_ref[...], preferred_element_type=jnp.float32)
    h = h + bfc_ref[...].astype(jnp.float32)

    # GELU in f32 on the VPU/EUP.
    h = _gelu_f32(h, approximate)

    # Partial proj: (tm, tI) @ (tI, E), accumulated in f32.
    # (astype to the weight dtype is an intentional operand downcast when
    # running the bf16 MXU path; accumulation stays f32.)
    acc_ref[...] += jnp.dot(h.astype(wproj_ref.dtype), wproj_ref[...],
                            preferred_element_type=jnp.float32)

    @pl.when(k == pl.num_programs(1) - 1)
    def _():
        out = acc_ref[...] + bproj_ref[...].astype(jnp.float32)
        o_ref[...] = out.astype(o_ref.dtype)


def prepare_gpt_neox_mlp_params(w_fc, b_fc, w_proj, b_proj, compute_dtype=None):
    """One-time (model-load) parameter prep.

    PyTorch nn.Linear stores weights as (out_features, in_features); transpose
    them ONCE here to (in, out) so the per-call kernel does plain x @ W with no
    per-call HBM transposes.  Optionally cast weights to `compute_dtype`
    (e.g. bf16 for the v6e/v7x MXU)."""
    I, E = w_fc.shape
    wd = compute_dtype if compute_dtype is not None else w_fc.dtype
    return {
        "wfc": jnp.asarray(w_fc).T.astype(wd),        # (E, I)
        "bfc": jnp.asarray(b_fc).reshape(1, I),       # (1, I)
        "wproj": jnp.asarray(w_proj).T.astype(wd),    # (I, E)
        "bproj": jnp.asarray(b_proj).reshape(1, E),   # (1, E)
    }


def gpt_neox_mlp(x, params, *, tm=256, t_inter=512, gelu_approximate="none",
                 compute_dtype=None, vmem_limit_bytes=64 * 1024 * 1024):
    """x: (B, T, n_embd); params from prepare_gpt_neox_mlp_params.

    Per-generation tuning:
      v6e/v7x: tm=256 (MXU height 256), compute_dtype=bf16; on v7x keep
               t_inter ~512 so double-buffered weight tiles fit 64 MiB VMEM.
      v5e:     tm=128, keep f32 VPU math; t_inter 128-512 (memory-bound, a
               deeper pipeline on the weight specs helps more than wider tiles).
    """
    B, T, E = x.shape
    out_dtype = x.dtype
    wfc, bfc = params["wfc"], params["bfc"]
    wproj, bproj = params["wproj"], params["bproj"]
    I = wfc.shape[1]

    if compute_dtype is not None:
        x = x.astype(compute_dtype)

    x2 = x.reshape(B * T, E)
    M = B * T

    # Row tile: multiple of 8 sublanes, clamped to the (padded) problem size;
    # pad M so any B*T works with a large tile.
    tm_eff = min(tm, _round_up(M, 8))
    M_pad = _round_up(M, tm_eff)
    if M_pad != M:
        x2 = jnp.pad(x2, ((0, M_pad - M), (0, 0)))

    # Intermediate tile: a multiple of 128 lanes that divides I (or all of I
    # for small/ragged configs).
    if I % 128 == 0 and I > t_inter:
        tI = max(128, (t_inter // 128) * 128)
        while I % tI != 0:
            tI -= 128
    else:
        tI = I
    nk = I // tI

    kernel = functools.partial(gpt_neox_mlp_kernel, approximate=gelu_approximate)

    out = pl.pallas_call(
        kernel,
        out_shape=jax.ShapeDtypeStruct((M_pad, E), out_dtype),
        grid_spec=pltpu.PrefetchScalarGridSpec(
            num_scalar_prefetch=0,
            grid=(M_pad // tm_eff, nk),
            in_specs=[
                pl.BlockSpec((tm_eff, E), lambda i, k: (i, 0)),  # x rows
                pl.BlockSpec((E, tI), lambda i, k: (0, k)),      # fc weight (in, out)
                pl.BlockSpec((1, tI), lambda i, k: (0, k)),      # fc bias
                pl.BlockSpec((tI, E), lambda i, k: (k, 0)),      # proj weight (in, out)
                pl.BlockSpec((1, E), lambda i, k: (0, 0)),       # proj bias
            ],
            out_specs=pl.BlockSpec((tm_eff, E), lambda i, k: (i, 0)),
            scratch_shapes=[pltpu.VMEM((tm_eff, E), jnp.float32)],
        ),
        compiler_params=pltpu.CompilerParams(
            dimension_semantics=("parallel", "arbitrary"),
            vmem_limit_bytes=vmem_limit_bytes,
        ),
    )(x2, wfc, bfc, wproj, bproj)

    if M_pad != M:
        out = out[:M]
    return out.reshape(B, T, E)


def _ref(x, w_fc, b_fc, w_proj, b_proj, approximate="none"):
    h = x @ w_fc.T + b_fc
    h = jax.nn.gelu(h, approximate=(approximate == "tanh"))
    return h @ w_proj.T + b_proj


if __name__ == "__main__":
    # ------------------------------------------------------------------
    # Test 1: small GPT-NeoX-style config (intermediate_size = 4 * n_embd),
    # exact GELU (approximate="none"), single intermediate tile.
    # ------------------------------------------------------------------
    B, T, E = 2, 8, 32
    I = 4 * E  # 128
    key = jax.random.PRNGKey(0)
    kx, kw1, kb1, kw2, kb2 = jax.random.split(key, 5)

    x = jax.random.normal(kx, (B, T, E), dtype=jnp.float32)
    # PyTorch nn.Linear weight layout: (out_features, in_features)
    w_fc = jax.random.normal(kw1, (I, E), dtype=jnp.float32) * 0.05
    b_fc = jax.random.normal(kb1, (I,), dtype=jnp.float32) * 0.05
    w_proj = jax.random.normal(kw2, (E, I), dtype=jnp.float32) * 0.05
    b_proj = jax.random.normal(kb2, (E,), dtype=jnp.float32) * 0.05

    params = prepare_gpt_neox_mlp_params(w_fc, b_fc, w_proj, b_proj)
    out = gpt_neox_mlp(x, params, gelu_approximate="none")
    out = jax.block_until_ready(out)

    ref = _ref(x, w_fc, b_fc, w_proj, b_proj, approximate="none")
    assert out.shape == (B, T, E)
    assert jnp.allclose(out, ref, atol=1e-4, rtol=1e-4), float(
        jnp.max(jnp.abs(out - ref)))

    # ------------------------------------------------------------------
    # Test 2: exercises the streamed/accumulated path (multiple intermediate
    # tiles), M not divisible by the row tile (padding), and tanh-GELU.
    # ------------------------------------------------------------------
    B2, T2, E2 = 2, 13, 128
    I2 = 4 * E2  # 512
    k2 = jax.random.PRNGKey(1)
    kx, kw1, kb1, kw2, kb2 = jax.random.split(k2, 5)
    x2 = jax.random.normal(kx, (B2, T2, E2), dtype=jnp.float32)
    w_fc2 = jax.random.normal(kw1, (I2, E2), dtype=jnp.float32) * 0.02
    b_fc2 = jax.random.normal(kb1, (I2,), dtype=jnp.float32) * 0.02
    w_proj2 = jax.random.normal(kw2, (E2, I2), dtype=jnp.float32) * 0.02
    b_proj2 = jax.random.normal(kb2, (E2,), dtype=jnp.float32) * 0.02

    params2 = prepare_gpt_neox_mlp_params(w_fc2, b_fc2, w_proj2, b_proj2)
    out2 = gpt_neox_mlp(x2, params2, t_inter=128, gelu_approximate="tanh")
    out2 = jax.block_until_ready(out2)

    ref2 = _ref(x2, w_fc2, b_fc2, w_proj2, b_proj2, approximate="tanh")
    assert out2.shape == (B2, T2, E2)
    assert jnp.allclose(out2, ref2, atol=1e-4, rtol=1e-4), float(
        jnp.max(jnp.abs(out2 - ref2)))

    print("KERNEL_OK")
</pallas_src>

<mosaic_0001>
module attributes {stable_mosaic.version = 11 : i64} {
  func.func @gpt_neox_mlp_kernel(%arg0: i32, %arg1: i32, %arg2: memref<16x32xf32, #tpu.memory_space<vmem>>, %arg3: memref<32x128xf32, #tpu.memory_space<vmem>>, %arg4: memref<1x128xf32, #tpu.memory_space<vmem>>, %arg5: memref<128x32xf32, #tpu.memory_space<vmem>>, %arg6: memref<1x32xf32, #tpu.memory_space<vmem>>, %arg7: memref<16x32xf32, #tpu.memory_space<vmem>>, %arg8: memref<16x32xf32, #tpu.memory_space<vmem>>) attributes {dimension_semantics = [#tpu.dimension_semantics<parallel>, #tpu.dimension_semantics<arbitrary>], iteration_bounds = array<i64: 1, 1>, scalar_prefetch = 0 : i64, scratch_operands = 1 : i64, tpu.core_type = #tpu.core_type<tc>, window_params = [{transform_indices = @transform_0, window_bounds = array<i64: 16, 32>}, {transform_indices = @transform_1, window_bounds = array<i64: 32, 128>}, {transform_indices = @transform_2, window_bounds = array<i64: 1, 128>}, {transform_indices = @transform_3, window_bounds = array<i64: 128, 32>}, {pipeline_mode = #tpu.pipeline_mode<synchronous>, transform_indices = @transform_4, window_bounds = array<i64: 1, 32>}, {transform_indices = @transform_5, window_bounds = array<i64: 16, 32>}]} {
    %c0_i32 = arith.constant 0 : i32
    %0 = arith.cmpi eq, %arg1, %c0_i32 : i32
    %1 = arith.extui %0 : i1 to i32
    %c0_i32_0 = arith.constant 0 : i32
    %2 = arith.cmpi ne, %1, %c0_i32_0 : i32
    scf.if %2 {
      %cst_30 = arith.constant 0.000000e+00 : f32
      %57 = vector.broadcast %cst_30 : f32 to vector<16x32xf32>
      %c0_31 = arith.constant 0 : index
      %c0_32 = arith.constant 0 : index
      %58 = vector.load %arg8[%c0_31, %c0_32] : memref<16x32xf32, #tpu.memory_space<vmem>>, vector<16x32xf32>
      tpu.vector_store %arg8[%c0_31, %c0_32], %57 {strides = array<i32>} : memref<16x32xf32, #tpu.memory_space<vmem>>, vector<16x32xf32>,
    } else {
    }
    %c0 = arith.constant 0 : index
    %c0_1 = arith.constant 0 : index
    %3 = vector.load %arg2[%c0, %c0_1] : memref<16x32xf32, #tpu.memory_space<vmem>>, vector<16x32xf32>
    %c0_2 = arith.constant 0 : index
    %c0_3 = arith.constant 0 : index
    %4 = vector.load %arg3[%c0_2, %c0_3] : memref<32x128xf32, #tpu.memory_space<vmem>>, vector<32x128xf32>
    %cst = arith.constant dense<0.000000e+00> : vector<16x128xf32>
    %5 = tpu.matmul %3, %4, %cst {dimension_numbers = #tpu.dot_dimension_numbers<[1], [0], [0], [1], [0, 0, 1, 1], [], []>} : vector<16x32xf32>, vector<32x128xf32>, vector<16x128xf32> -> vector<16x128xf32>
    %c0_4 = arith.constant 0 : index
    %c0_5 = arith.constant 0 : index
    %6 = vector.load %arg4[%c0_4, %c0_5] : memref<1x128xf32, #tpu.memory_space<vmem>>, vector<1x128xf32>
    %7 = vector.broadcast %6 : vector<1x128xf32> to vector<16x128xf32>
    %8 = arith.addf %5, %7 : vector<16x128xf32>
    %cst_6 = arith.constant 5.000000e-01 : f32
    %9 = vector.broadcast %cst_6 : f32 to vector<16x128xf32>
    %10 = arith.mulf %9, %8 : vector<16x128xf32>
    %cst_7 = arith.constant 0.707106769 : f32
    %11 = vector.broadcast %cst_7 : f32 to vector<16x128xf32>
    %12 = arith.mulf %8, %11 : vector<16x128xf32>
    %13 = math.absf %12 : vector<16x128xf32>
    %cst_8 = arith.constant 0.327591091 : f32
    %14 = vector.broadcast %cst_8 : f32 to vector<16x128xf32>
    %15 = arith.mulf %14, %13 : vector<16x128xf32>
    %cst_9 = arith.constant 1.000000e+00 : f32
    %16 = vector.broadcast %cst_9 : f32 to vector<16x128xf32>
    %17 = arith.addf %16, %15 : vector<16x128xf32>
    %cst_10 = arith.constant 1.000000e+00 : f32
    %18 = vector.broadcast %cst_10 : f32 to vector<16x128xf32>
    %19 = arith.divf %18, %17 : vector<16x128xf32>
    %cst_11 = arith.constant 1.06140542 : f32
    %20 = vector.broadcast %cst_11 : f32 to vector<16x128xf32>
    %21 = arith.mulf %20, %19 : vector<16x128xf32>
    %cst_12 = arith.constant -1.45315206 : f32
    %22 = vector.broadcast %cst_12 : f32 to vector<16x128xf32>
    %23 = arith.addf %21, %22 : vector<16x128xf32>
    %24 = arith.mulf %23, %19 : vector<16x128xf32>
    %cst_13 = arith.constant 1.42141378 : f32
    %25 = vector.broadcast %cst_13 : f32 to vector<16x128xf32>
    %26 = arith.addf %24, %25 : vector<16x128xf32>
    %27 = arith.mulf %26, %19 : vector<16x128xf32>
    %cst_14 = arith.constant -0.284496725 : f32
    %28 = vector.broadcast %cst_14 : f32 to vector<16x128xf32>
    %29 = arith.addf %27, %28 : vector<16x128xf32>
    %30 = arith.mulf %29, %19 : vector<16x128xf32>
    %cst_15 = arith.constant 0.254829586 : f32
    %31 = vector.broadcast %cst_15 : f32 to vector<16x128xf32>
    %32 = arith.addf %30, %31 : vector<16x128xf32>
    %33 = arith.mulf %32, %19 : vector<16x128xf32>
    %cst_16 = arith.constant 0.000000e+00 : f32
    %34 = vector.broadcast %cst_16 : f32 to vector<16x128xf32>
    %35 = arith.subf %34, %13 : vector<16x128xf32>
    %36 = arith.mulf %35, %13 : vector<16x128xf32>
    %37 = math.exp %36 : vector<16x128xf32>
    %38 = arith.mulf %33, %37 : vector<16x128xf32>
    %cst_17 = arith.constant 1.000000e+00 : f32
    %39 = vector.broadcast %cst_17 : f32 to vector<16x128xf32>
    %40 = arith.subf %39, %38 : vector<16x128xf32>
    %cst_18 = arith.constant 0.000000e+00 : f32
    %41 = vector.broadcast %cst_18 : f32 to vector<16x128xf32>
    %42 = arith.cmpf olt, %12, %41 : vector<16x128xf32>
    %cst_19 = arith.constant 0.000000e+00 : f32
    %43 = vector.broadcast %cst_19 : f32 to vector<16x128xf32>
    %44 = arith.subf %43, %40 : vector<16x128xf32>
    %45 = arith.select %42, %44, %40 : vector<16x128xi1>, vector<16x128xf32>
    %cst_20 = arith.constant 1.000000e+00 : f32
    %46 = vector.broadcast %cst_20 : f32 to vector<16x128xf32>
    %47 = arith.addf %46, %45 : vector<16x128xf32>
    %48 = arith.mulf %10, %47 : vector<16x128xf32>
    %c0_21 = arith.constant 0 : index
    %c0_22 = arith.constant 0 : index
    %49 = vector.load %arg8[%c0_21, %c0_22] : memref<16x32xf32, #tpu.memory_space<vmem>>, vector<16x32xf32>
    %c0_23 = arith.constant 0 : index
    %c0_24 = arith.constant 0 : index
    %50 = vector.load %arg5[%c0_23, %c0_24] : memref<128x32xf32, #tpu.memory_space<vmem>>, vector<128x32xf32>
    %cst_25 = arith.constant dense<0.000000e+00> : vector<16x32xf32>
    %51 = tpu.matmul %48, %50, %cst_25 {dimension_numbers = #tpu.dot_dimension_numbers<[1], [0], [0], [1], [0, 0, 1, 1], [], []>} : vector<16x128xf32>, vector<128x32xf32>, vector<16x32xf32> -> vector<16x32xf32>
    %52 = arith.addf %49, %51 : vector<16x32xf32>
    %c0_26 = arith.constant 0 : index
    %c0_27 = arith.constant 0 : index
    %53 = vector.load %arg8[%c0_26, %c0_27] : memref<16x32xf32, #tpu.memory_space<vmem>>, vector<16x32xf32>
    tpu.vector_store %arg8[%c0_26, %c0_27], %52 {strides = array<i32>} : memref<16x32xf32, #tpu.memory_space<vmem>>, vector<16x32xf32>,
    %c0_i32_28 = arith.constant 0 : i32
    %54 = arith.cmpi eq, %arg1, %c0_i32_28 : i32
    %55 = arith.extui %54 : i1 to i32
    %c0_i32_29 = arith.constant 0 : i32
    %56 = arith.cmpi ne, %55, %c0_i32_29 : i32
    scf.if %56 {
      %c0_30 = arith.constant 0 : index
      %c0_31 = arith.constant 0 : index
      %57 = vector.load %arg8[%c0_30, %c0_31] : memref<16x32xf32, #tpu.memory_space<vmem>>, vector<16x32xf32>
      %c0_32 = arith.constant 0 : index
      %c0_33 = arith.constant 0 : index
      %58 = vector.load %arg6[%c0_32, %c0_33] : memref<1x32xf32, #tpu.memory_space<vmem>>, vector<1x32xf32>
      %59 = vector.broadcast %58 : vector<1x32xf32> to vector<16x32xf32>
      %60 = arith.addf %57, %59 : vector<16x32xf32>
      %c0_34 = arith.constant 0 : index
      %c0_35 = arith.constant 0 : index
      %61 = vector.load %arg7[%c0_34, %c0_35] : memref<16x32xf32, #tpu.memory_space<vmem>>, vector<16x32xf32>
      tpu.vector_store %arg7[%c0_34, %c0_35], %60 {strides = array<i32>} : memref<16x32xf32, #tpu.memory_space<vmem>>, vector<16x32xf32>,
    } else {
    }
    return
  }
  func.func @transform_0(%arg0: i32, %arg1: i32) -> (i32, i32) {
    %c0_i32 = arith.constant 0 : i32
    %c0_i32_0 = arith.constant 0 : i32
    return %arg0, %c0_i32 : i32, i32
  }
  func.func @transform_1(%arg0: i32, %arg1: i32) -> (i32, i32) {
    %c0_i32 = arith.constant 0 : i32
    %c0_i32_0 = arith.constant 0 : i32
    return %c0_i32, %arg1 : i32, i32
  }
  func.func @transform_2(%arg0: i32, %arg1: i32) -> (i32, i32) {
    %c0_i32 = arith.constant 0 : i32
    %c0_i32_0 = arith.constant 0 : i32
    return %c0_i32, %arg1 : i32, i32
  }
  func.func @transform_3(%arg0: i32, %arg1: i32) -> (i32, i32) {
    %c0_i32 = arith.constant 0 : i32
    %c0_i32_0 = arith.constant 0 : i32
    return %arg1, %c0_i32 : i32, i32
  }
  func.func @transform_4(%arg0: i32, %arg1: i32) -> (i32, i32) {
    %c0_i32 = arith.constant 0 : i32
    %c0_i32_0 = arith.constant 0 : i32
    %c0_i32_1 = arith.constant 0 : i32
    return %c0_i32, %c0_i32_0 : i32, i32
  }
  func.func @transform_5(%arg0: i32, %arg1: i32) -> (i32, i32) {
    %c0_i32 = arith.constant 0 : i32
    %c0_i32_0 = arith.constant 0 : i32
    return %arg0, %c0_i32 : i32, i32
  }
}

</mosaic_0001>

<bundles_post_ra>
// kernel: tpu_custom_call.1
= control target key start
LH: loop header
LB: loop body
LE: loop exit
PB: predicated region body
PF: predicated region fallthrough
CT: control target
= control target key end

     0   :  { %s425_s0 = inlined_call_operand.vmem [shape: f32[16,32], index: 0, kind: input, shape index: {}]   ;;  %s426_s1 = inlined_call_operand.vmem [shape: f32[32,128], index: 1, kind: input, shape index: {}]   ;;  %s427_s2 = inlined_call_operand.vmem [shape: f32[1,128], index: 2, kind: input, shape index: {}]   ;;  %s428_s3 = inlined_call_operand.vmem [shape: f32[128,32], index: 3, kind: input, shape index: {}]   ;;  %s429_s4 = inlined_call_operand.vmem [shape: f32[1,32], index: 4, kind: input, shape index: {}]   ;;  %s430_s5 = inlined_call_operand.hbm [shape: f32[16,32], index: 5, kind: output, shape index: {}]  }
   0x1   :  { %v33_v0 = vld [vmem:[%s426_s1 + $0x18] sm:$0xff]  ;;  %v32_v1 = vld [vmem:[%s426_s1 + $0x10] sm:$0xff]  ;;  %v31_v2 = vld [vmem:[%s426_s1 + $0x8] sm:$0xff] }
   0x2   :  { %57 = vmatpush.msra.mxu0 %v33_v0 }
   0x3   :  { %10 = vsyncpa [#allocation4], 0  ;;  %v30_v3 = vld [vmem:[%s426_s1] sm:$0xff]  ;;  %vm25_vm0 = vcmask 261120   ;;  %v29_v5 = vld [vmem:[%s425_s0 + $0x8] sm:$0xff]  ;;  %v282_v61 = vmov 0.0  }
   0x4   :  { %58 = vmatpush.msra.mxu0 %v32_v1  ;;  %v28_v4 = vld [vmem:[%s425_s0] sm:$0xff]  ;;  %v165_v6 = vld [vmem:[%s428_s3 + $0x78] sm:$0xff]  ;;  %v164_v7 = vld [vmem:[%s428_s3 + $0x70] sm:$0xff]  ;;  %26 = vst.msk [vmem:[#allocation2] sm:$0xff] %vm25_vm0, %v282_v61  ;;  %s283_s0 = smov [#allocation3]   ;;  %s212_s14 = sshll.u32 %s430_s5, 4  ;;  %s213_s14 = int_to_ptr.hbm [resolvable:$true] %s212_s14 }
   0x5   :  { %166 = vmatpush.msra.mxu1 %v165_v6  ;;  %226 = vmatpush.msra.mxu2 %v165_v6  ;;  %v246_v8 = vld [vmem:[%s427_s2] ss:$0 sm:$0xff]  ;;  %v163_v9 = vld [vmem:[%s428_s3 + $0x68] sm:$0xff]  ;;  %v161_v12 = vld [vmem:[%s428_s3 + $0x58] sm:$0xff]  ;;  %27 = vst.msk [vmem:[#allocation2 + $0x8] sm:$0xff] %vm25_vm0, %v282_v61  ;;  %s210_s11 = sshll.u32 %s283_s0, 4  ;;  %s211_s11 = int_to_ptr.vmem [resolvable:$true] %s210_s11 }
   0x6   :  { %59 = vmatpush.msra.mxu0 %v31_v2  ;;  %v162_v10 = vld [vmem:[%s428_s3 + $0x60] sm:$0xff]  ;;  %v160_v14 = vld [vmem:[%s428_s3 + $0x50] sm:$0xff]  ;;  %v159_v16 = vld [vmem:[%s428_s3 + $0x48] sm:$0xff]  ;;  %s285_s2 = smov 8  }
   0x7   :  { %167 = vmatpush.msra.mxu1 %v164_v7  ;;  %227 = vmatpush.msra.mxu2 %v164_v7  ;;  %v158_v18 = vld [vmem:[%s428_s3 + $0x40] sm:$0xff]  ;;  %v157_v21 = vld [vmem:[%s428_s3 + $0x38] sm:$0xff]  ;;  %v156_v24 = vld [vmem:[%s428_s3 + $0x30] sm:$0xff] }
   0x8   :  { %60 = vmatpush.msra.mxu0 %v30_v3  ;;  %v155_v26 = vld [vmem:[%s428_s3 + $0x28] sm:$0xff]  ;;  %v154_v28 = vld [vmem:[%s428_s3 + $0x20] sm:$0xff]  ;;  %v153_v30 = vld [vmem:[%s428_s3 + $0x18] sm:$0xff] }
   0x9   :  { %224 = vmatmul.msk.f32.vlgmr.msra.gmra.mxu0 %vm25_vm0, %v28_v4  ;;  %168 = vmatpush.msra.mxu1 %v163_v9  ;;  %v152_v34 = vld [vmem:[%s428_s3 + $0x10] sm:$0xff]  ;;  %v151_v36 = vld [vmem:[%s428_s3 + $0x8] sm:$0xff]  ;;  %v150_v39 = vld [vmem:[%s428_s3] sm:$0xff] }
   0xa   :  { %228 = vmatpush.msra.mxu2 %v163_v9 }
   0xb   :  { %169 = vmatpush.msra.mxu1 %v162_v10 }
   0xc   :  { %229 = vmatpush.msra.mxu2 %v162_v10 }
   0xd   :  { %170 = vmatpush.msra.mxu1 %v161_v12 }
   0xe   :  { %230 = vmatpush.msra.mxu2 %v161_v12 }
   0xf   :  { %171 = vmatpush.msra.mxu1 %v160_v14 }
  0x10   :  { %231 = vmatpush.msra.mxu2 %v160_v14 }
  0x11   :  { %225 = vmatmul.msk.f32.gmra.mxu0 %vm25_vm0, %v29_v5  ;;  %172 = vmatpush.msra.mxu1 %v159_v16 }
  0x12   :  { %232 = vmatpush.msra.mxu2 %v159_v16 }
  0x13   :  { %173 = vmatpush.msra.mxu1 %v158_v18 }
  0x14   :  { %233 = vmatpush.msra.mxu2 %v158_v18 }
  0x15   :  { %174 = vmatpush.msra.mxu1 %v157_v21 }
  0x16   :  { %234 = vmatpush.msra.mxu2 %v157_v21 }
  0x17   :  { %175 = vmatpush.msra.mxu1 %v156_v24 }
  0x18   :  { %235 = vmatpush.msra.mxu2 %v156_v24 }
  0x19   :  { %176 = vmatpush.msra.mxu1 %v155_v26 }
  0x1a   :  { %236 = vmatpush.msra.mxu2 %v155_v26 }
  0x1b   :  { %177 = vmatpush.msra.mxu1 %v154_v28 }
  0x1c   :  { %237 = vmatpush.msra.mxu2 %v154_v28 }
  0x1d   :  { %178 = vmatpush.msra.mxu1 %v153_v30 }
  0x1e   :  { %238 = vmatpush.msra.mxu2 %v153_v30 }
  0x1f   :  { %179 = vmatpush.msra.mxu1 %v152_v34 }
  0x20   :  { %239 = vmatpush.msra.mxu2 %v152_v34 }
  0x21   :  { %180 = vmatpush.msra.mxu1 %v151_v36 }
  0x22   :  { %240 = vmatpush.msra.mxu2 %v151_v36 }
  0x23   :  { %181 = vmatpush.msra.mxu1 %v150_v39 }
  0x24   :  { %241 = vmatpush.msra.mxu2 %v150_v39 }
  0x86   :  { %v62_v11 = vpop.f32.mrf.mxu0 }
  0x87   :  { %v354_v13 = vadd.f32 %v246_v8, %v62_v11 }
  0x89   :  { %v360_v15 = vmul.f32 0.70710677, %v354_v13 }
  0x8b   :  { %v366_v17 = vand.u32 2147483647, %v360_v15  ;;  %vm138_vm9 = vcmp.lt.f32.partialorder %v360_v15, 0.0  ;;  %v148_v15 = vld [vmem:[#allocation2] sm:$0xff] }
  0x8d   :  { %v74_v19 = vmul.f32 0.3275911, %v366_v17  ;;  %v126_v45 = vsub.f32 0.0, %v366_v17 }
  0x8e   :  { %v65_v20 = vpop.f32.mrf.mxu0 }
  0x8f   :  { %v76_v22 = vadd.f32 1.0, %v74_v19  ;;  %v375_v23 = vadd.f32 %v246_v8, %v65_v20  ;;  %v128_v52 = vmul.f32 %v126_v45, %v366_v17 }
  0x91   :  { %248 = vrcp.f32 %v76_v22  ;;  %v381_v25 = vmul.f32 0.70710677, %v375_v23  ;;  %v89_v37 = vand.u32 2147483648, %v76_v22  ;;  %v87_v40 = vand.u32 2147483647, %v76_v22 }
  0x92   :  { %vm83_vm2 = vweird.f32 %v76_v22  ;;  %v130_v59 = vmul.f32 1.442695, %v128_v52 }
  0x93   :  { %v387_v27 = vand.u32 2147483647, %v381_v25  ;;  %v90_v42 = vor.u32 1.1754944e-38, %v89_v37  ;;  %vm88_vm4 = vcmp.eq.f32.partialorder %v87_v40, 8.507059e+37  ;;  %vm139_vm10 = vcmp.lt.f32.partialorder %v381_v25, 0.0  ;;  %v149_v40 = vld [vmem:[#allocation2 + $0x8] sm:$0xff] }
  0x95   :  { %v75_v29 = vmul.f32 0.3275911, %v387_v27  ;;  %v127_v62 = vsub.f32 0.0, %v387_v27 }
  0x97   :  { %v249_v31 = vpop.eup %248  ;;  %v77_v33 = vadd.f32 1.0, %v75_v29  ;;  %v129_v4 = vmul.f32 %v127_v62, %v387_v27 }
  0x98   :  { %v79_v32 = vmul.f32 %v249_v31, %v76_v22  ;;  %vm84_vm1 = vweird.f32 %v249_v31  ;;  %v68_v22 = vmul.f32 0.5, %v354_v13  ;;  %v247_v13 = vld [vmem:[%s429_s4] ss:$0 sm:$0xff]  ;;  %s284_s4 = smov 128  }
  0x99   :  { %250 = vrcp.f32 %v77_v33  ;;  %vm85_vm3 = vmor %vm83_vm2, %vm84_vm1  ;;  %v104_v51 = vand.u32 2147483648, %v77_v33  ;;  %v102_v54 = vand.u32 2147483647, %v77_v33  ;;  %vm98_vm6 = vweird.f32 %v77_v33 }
  0x9a   :  { %v80_v35 = vsub.f32 1.0, %v79_v32  ;;  %252 = vpow2.f32 %v130_v59  ;;  %v132_v9 = vmul.f32 1.442695, %v129_v4 }
  0x9b   :  { %v105_v58 = vor.u32 1.1754944e-38, %v104_v51  ;;  %vm103_vm8 = vcmp.eq.f32.partialorder %v102_v54, 8.507059e+37 }
  0x9c   :  { %v81_v38 = vmul.f32 %v249_v31, %v80_v35  ;;  %254 = vpow2.f32 %v132_v9 }
  0x9e   :  { %v82_v41 = vadd.f32 %v249_v31, %v81_v38 }
  0x9f   :  { %v251_v43 = vpop.eup %250 }
  0xa0   :  { %v86_v44 = vsel %vm85_vm3, %v249_v31, %v82_v41  ;;  %v94_v46 = vmul.f32 %v251_v43, %v77_v33  ;;  %vm99_vm5 = vweird.f32 %v251_v43  ;;  %v253_v11 = vpop.eup %252  ;;  %v69_v33 = vmul.f32 0.5, %v375_v23 }
  0xa1   :  { %v91_v47 = vsel %vm88_vm4, %v90_v42, %v86_v44  ;;  %vm100_vm7 = vmor %vm98_vm6, %vm99_vm5 }
  0xa2   :  { %v108_v48 = vmul.f32 1.0614054, %v91_v47  ;;  %v95_v49 = vsub.f32 1.0, %v94_v46  ;;  %v255_v27 = vpop.eup %254 }
  0xa4   :  { %v110_v50 = vadd.f32 -1.4531521, %v108_v48  ;;  %v96_v53 = vmul.f32 %v251_v43, %v95_v49 }
  0xa6   :  { %v112_v55 = vmul.f32 %v110_v50, %v91_v47  ;;  %v97_v56 = vadd.f32 %v251_v43, %v96_v53 }
  0xa8   :  { %v114_v57 = vadd.f32 1.4214138, %v112_v55  ;;  %v101_v60 = vsel %vm100_vm7, %v251_v43, %v97_v56 }
  0xa9   :  { %v106_v0 = vsel %vm103_vm8, %v105_v58, %v101_v60 }
  0xaa   :  { %v116_v63 = vmul.f32 %v114_v57, %v91_v47  ;;  %v109_v1 = vmul.f32 1.0614054, %v106_v0 }
  0xac   :  { %v118_v2 = vadd.f32 -0.28449672, %v116_v63  ;;  %v111_v3 = vadd.f32 -1.4531521, %v109_v1 }
  0xae   :  { %v120_v5 = vmul.f32 %v118_v2, %v91_v47  ;;  %v113_v6 = vmul.f32 %v111_v3, %v106_v0 }
  0xb0   :  { %v122_v7 = vadd.f32 0.2548296, %v120_v5  ;;  %v115_v8 = vadd.f32 1.4214138, %v113_v6 }
  0xb2   :  { %v124_v10 = vmul.f32 %v122_v7, %v91_v47  ;;  %v117_v12 = vmul.f32 %v115_v8, %v106_v0 }
  0xb4   :  { %v134_v14 = vmul.f32 %v253_v11, %v124_v10  ;;  %v119_v16 = vadd.f32 -0.28449672, %v117_v12 }
  0xb6   :  { %v136_v17 = vsub.f32 1.0, %v134_v14  ;;  %v121_v18 = vmul.f32 %v119_v16, %v106_v0 }
  0xb8   :  { %v140_v19 = vsub.f32 0.0, %v136_v17  ;;  %v123_v20 = vadd.f32 0.2548296, %v121_v18 }
  0xba   :  { %v142_v21 = vsel %vm138_vm9, %v140_v19, %v136_v17  ;;  %v125_v26 = vmul.f32 %v123_v20, %v106_v0 }
  0xbb   :  { %v144_v24 = vadd.f32 1.0, %v142_v21 }
  0xbc   :  { %v135_v29 = vmul.f32 %v255_v27, %v125_v26 }
  0xbd   :  { %v146_v28 = vmul.f32 %v144_v24, %v68_v22 }
  0xbe   :  { %v137_v30 = vsub.f32 1.0, %v135_v29 }
  0xbf   :  { %182 = vmatmul.f32.vlgmr.msra.gmra.mxu1 %v146_v28 }
  0xc0   :  { %v141_v31 = vsub.f32 0.0, %v137_v30 }
  0xc2   :  { %v143_v32 = vsel %vm139_vm10, %v141_v31, %v137_v30 }
  0xc3   :  { %v145_v34 = vadd.f32 1.0, %v143_v32 }
  0xc5   :  { %v147_v35 = vmul.f32 %v145_v34, %v69_v33 }
  0xc7   :  { %185 = vmatmul.f32.vlgmr.msra.gmra.mxu2 %v147_v35 }
 0x13c   :  { %v183_v36 = vpop.f32.mrf.mxu1 }
 0x13d   :  { %v189_v37 = vadd.f32 %v183_v36, %v148_v15 }
 0x13f   :  { %191 = vst.msk [vmem:[#allocation2] sm:$0xff] %vm25_vm0, %v189_v37 }
 0x146   :  { %v196_v38 = vld [vmem:[#allocation2] sm:$0xff] }
 0x147   :  { %v202_v39 = vadd.f32 %v247_v13, %v196_v38 }
 0x149   :  { %204 = vst.msk [vmem:[#allocation3] sm:$0xff] %vm25_vm0, %v202_v39 }
 0x14a   :  { %v186_v25 = vpop.f32.mrf.mxu2 }
 0x14b   :  { %v190_v41 = vadd.f32 %v186_v25, %v149_v40 }
 0x14d   :  { %192 = vst.msk [vmem:[#allocation2 + $0x8] sm:$0xff] %vm25_vm0, %v190_v41 }
 0x154   :  { %v197_v23 = vld [vmem:[#allocation2 + $0x8] sm:$0xff] }
 0x155   :  { %v203_v42 = vadd.f32 %v247_v13, %v197_v23 }
 0x157   :  { %205 = vst.msk [vmem:[#allocation3 + $0x8] sm:$0xff] %vm25_vm0, %v203_v42 }
 0x158   :  { %218 = dma.vmem_to_hbm [thread:$0]  %s211_s11, 256, %s213_s14, [#allocation4], %s284_s4, %s284_s4, %s285_s2  }
 0x159   :  { %280 = dma.done.wait [#allocation4], 256  }
 0x15a   :  { %281 = vsyncadd [#allocation4], 4294967040 }
 0x15b   :  { %223 = vsyncpa [#allocation4], 1 }

</bundles_post_ra>
